<compile_context>
chip_gen: v7x
topology: tpu7x:2x2x1
jax: 0.10.0
libtpu: 0.0.40
codegen_flags: <defaults>
</compile_context>

<pallas_src>
import jax
import jax.numpy as jnp
from jax.experimental import pallas as pl
from jax.experimental.pallas import tpu as pltpu


def _fused_mlp_kernel(x_ref, w1_ref, b1_ref, w2_ref, b2_ref, w3_ref, b3_ref,
                      out_ref):
    """One projector MLP per grid step: Linear->ReLU->Linear->ReLU->Linear->Tanh.

    x_ref:  (TM, S)        f32
    w*_ref: (din, dout)    bf16   (leading projector dim squeezed by BlockSpec)
    b*_ref: (1, dout)      f32
    out:    (TM, max_out)  f32
    """
    xb = x_ref[...].astype(jnp.bfloat16)
    h = jnp.dot(xb, w1_ref[...], preferred_element_type=jnp.float32) + b1_ref[...]
    h = jnp.maximum(h, 0.0)
    h = jnp.dot(h.astype(jnp.bfloat16), w2_ref[...],
                preferred_element_type=jnp.float32) + b2_ref[...]
    h = jnp.maximum(h, 0.0)
    h = jnp.dot(h.astype(jnp.bfloat16), w3_ref[...],
                preferred_element_type=jnp.float32) + b3_ref[...]
    out_ref[...] = jnp.tanh(h).astype(out_ref.dtype)


def voice_description_encoder_forward(sentence_embeddings, params, *,
                                      batch_tile=None):
    """Returns (speaker_embedding [B, voice_dim], gpt_cond_latent [B, gpt_dim])."""
    x = sentence_embeddings
    B, S = x.shape
    max_out = params["w3"].shape[2]
    voice_dim = params["voice_dim"]
    gpt_dim = params["gpt_dim"]

    if batch_tile is None:
        # Whole batch per tile at small B; tile at 128 rows for large batches.
        batch_tile = B if B <= 128 else 128
    nb = pl.cdiv(B, batch_tile)

    # x is shared by both projectors: its block index is constant along the
    # projector axis, so it is not re-DMA'd between the two grid steps.
    x_spec = pl.BlockSpec((batch_tile, S), lambda p, b: (b, 0))

    def stacked_spec(arr):
        # Leading projector dim is selected by grid axis 0 and squeezed away.
        return pl.BlockSpec((None,) + arr.shape[1:], lambda p, b: (p, 0, 0))

    out = pl.pallas_call(
        _fused_mlp_kernel,
        out_shape=jax.ShapeDtypeStruct((2, B, max_out), jnp.float32),
        grid=(2, nb),
        in_specs=[
            x_spec,
            stacked_spec(params["w1"]), stacked_spec(params["b1"]),
            stacked_spec(params["w2"]), stacked_spec(params["b2"]),
            stacked_spec(params["w3"]), stacked_spec(params["b3"]),
        ],
        out_specs=pl.BlockSpec((None, batch_tile, max_out),
                               lambda p, b: (p, b, 0)),
        compiler_params=pltpu.CompilerParams(
            # projector axis parallel (2 TCs on v7x), batch axis parallel too
            # (every (p, b) output block is independent, no reduction axis).
            dimension_semantics=("parallel", "parallel"),
        ),
    )(x, params["w1"], params["b1"], params["w2"], params["b2"],
      params["w3"], params["b3"])

    speaker_embedding = out[0, :, :voice_dim]
    gpt_cond_latent = out[1, :, :gpt_dim]
    return speaker_embedding, gpt_cond_latent


def init_params(key, sentence_dim, voice_dim, gpt_dim, hidden_dim,
                weight_dtype=jnp.bfloat16):
    """Deterministic synthetic init.

    Weights are stacked as [2, in, out] (index 0 = speaker, 1 = gpt_cond) and
    stored in bf16; biases stacked as [2, 1, out] in f32.  Layer-3 weights/bias
    of the smaller projector are zero-padded to max(voice_dim, gpt_dim).
    """
    def linear(k, d_in, d_out):
        kw, kb = jax.random.split(k)
        scale = 1.0 / jnp.sqrt(jnp.float32(d_in))
        w = jax.random.uniform(kw, (d_in, d_out), jnp.float32, -scale, scale)
        b = jax.random.uniform(kb, (1, d_out), jnp.float32, -scale, scale)
        return w, b

    max_out = max(voice_dim, gpt_dim)

    def pad_cols(a):
        pad = max_out - a.shape[-1]
        return a if pad == 0 else jnp.pad(a, ((0, 0), (0, pad)))

    keys = jax.random.split(key, 6)
    sp_w1, sp_b1 = linear(keys[0], sentence_dim, hidden_dim)
    sp_w2, sp_b2 = linear(keys[1], hidden_dim, hidden_dim)
    sp_w3, sp_b3 = linear(keys[2], hidden_dim, voice_dim)
    gp_w1, gp_b1 = linear(keys[3], sentence_dim, hidden_dim)
    gp_w2, gp_b2 = linear(keys[4], hidden_dim, hidden_dim)
    gp_w3, gp_b3 = linear(keys[5], hidden_dim, gpt_dim)

    return {
        "w1": jnp.stack([sp_w1, gp_w1]).astype(weight_dtype),
        "b1": jnp.stack([sp_b1, gp_b1]),
        "w2": jnp.stack([sp_w2, gp_w2]).astype(weight_dtype),
        "b2": jnp.stack([sp_b2, gp_b2]),
        "w3": jnp.stack([pad_cols(sp_w3), pad_cols(gp_w3)]).astype(weight_dtype),
        "b3": jnp.stack([pad_cols(sp_b3), pad_cols(gp_b3)]),
        "voice_dim": voice_dim,
        "gpt_dim": gpt_dim,
    }


def _reference_forward(x, params):
    """Pure-JAX reference mirroring the kernel's bf16-weight / f32-accum math."""
    def mlp(i):
        h = jnp.dot(x.astype(jnp.bfloat16), params["w1"][i],
                    preferred_element_type=jnp.float32) + params["b1"][i]
        h = jnp.maximum(h, 0.0)
        h = jnp.dot(h.astype(jnp.bfloat16), params["w2"][i],
                    preferred_element_type=jnp.float32) + params["b2"][i]
        h = jnp.maximum(h, 0.0)
        h = jnp.dot(h.astype(jnp.bfloat16), params["w3"][i],
                    preferred_element_type=jnp.float32) + params["b3"][i]
        return jnp.tanh(h)
    speaker = mlp(0)[:, :params["voice_dim"]]
    gpt = mlp(1)[:, :params["gpt_dim"]]
    return speaker, gpt


if __name__ == "__main__":
    # Small shapes consistent with the module's forward (scaled-down dims).
    batch = 8
    sentence_dim = 128   # sentence_embedding_dim
    hidden_dim = 256     # hidden_dim
    voice_dim = 128      # voice_embedding_dim
    gpt_dim = 256        # gpt_cond_latent_dim

    key = jax.random.PRNGKey(0)
    k_params, k_x = jax.random.split(key)
    params = init_params(k_params, sentence_dim, voice_dim, gpt_dim, hidden_dim)
    x = jax.random.normal(k_x, (batch, sentence_dim), jnp.float32)

    speaker_emb, gpt_latent = voice_description_encoder_forward(x, params)
    speaker_emb = jax.block_until_ready(speaker_emb)
    gpt_latent = jax.block_until_ready(gpt_latent)

    ref_speaker, ref_gpt = _reference_forward(x, params)
    assert speaker_emb.shape == (batch, voice_dim)
    assert gpt_latent.shape == (batch, gpt_dim)
    assert jnp.allclose(speaker_emb, ref_speaker, atol=2e-3, rtol=2e-3)
    assert jnp.allclose(gpt_latent, ref_gpt, atol=2e-3, rtol=2e-3)

    print("KERNEL_OK")
</pallas_src>

<mosaic_0001>
module attributes {stable_mosaic.version = 11 : i64} {
  func.func @_fused_mlp_kernel(%arg0: i32, %arg1: i32, %arg2: memref<8x128xf32, #tpu.memory_space<vmem>>, %arg3: memref<1x128x256xbf16, #tpu.memory_space<vmem>>, %arg4: memref<1x1x256xf32, #tpu.memory_space<vmem>>, %arg5: memref<1x256x256xbf16, #tpu.memory_space<vmem>>, %arg6: memref<1x1x256xf32, #tpu.memory_space<vmem>>, %arg7: memref<1x256x256xbf16, #tpu.memory_space<vmem>>, %arg8: memref<1x1x256xf32, #tpu.memory_space<vmem>>, %arg9: memref<1x8x256xf32, #tpu.memory_space<vmem>>) attributes {dimension_semantics = [#tpu.dimension_semantics<parallel>, #tpu.dimension_semantics<parallel>], iteration_bounds = array<i64: 2, 1>, scalar_prefetch = 0 : i64, scratch_operands = 0 : i64, tpu.core_type = #tpu.core_type<tc>, window_params = [{transform_indices = @transform_0, window_bounds = array<i64: 8, 128>}, {transform_indices = @transform_1, window_bounds = array<i64: 1, 128, 256>}, {transform_indices = @transform_2, window_bounds = array<i64: 1, 1, 256>}, {transform_indices = @transform_3, window_bounds = array<i64: 1, 256, 256>}, {transform_indices = @transform_4, window_bounds = array<i64: 1, 1, 256>}, {transform_indices = @transform_5, window_bounds = array<i64: 1, 256, 256>}, {transform_indices = @transform_6, window_bounds = array<i64: 1, 1, 256>}, {transform_indices = @transform_7, window_bounds = array<i64: 1, 8, 256>}]} {
    %c0 = arith.constant 0 : index
    %c0_0 = arith.constant 0 : index
    %0 = vector.load %arg2[%c0, %c0_0] : memref<8x128xf32, #tpu.memory_space<vmem>>, vector<8x128xf32>
    %1 = arith.truncf %0 : vector<8x128xf32> to vector<8x128xbf16>
    %c0_1 = arith.constant 0 : index
    %c0_2 = arith.constant 0 : index
    %c0_3 = arith.constant 0 : index
    %2 = vector.load %arg3[%c0_1, %c0_2, %c0_3] : memref<1x128x256xbf16, #tpu.memory_space<vmem>>, vector<1x128x256xbf16>
    %3 = vector.shape_cast %2 : vector<1x128x256xbf16> to vector<128x256xbf16>
    %cst = arith.constant dense<0.000000e+00> : vector<8x256xf32>
    %4 = tpu.matmul %1, %3, %cst {dimension_numbers = #tpu.dot_dimension_numbers<[1], [0], [0], [1], [0, 0, 1, 1], [], []>} : vector<8x128xbf16>, vector<128x256xbf16>, vector<8x256xf32> -> vector<8x256xf32>
    %c0_4 = arith.constant 0 : index
    %c0_5 = arith.constant 0 : index
    %c0_6 = arith.constant 0 : index
    %5 = vector.load %arg4[%c0_4, %c0_5, %c0_6] : memref<1x1x256xf32, #tpu.memory_space<vmem>>, vector<1x1x256xf32>
    %6 = vector.shape_cast %5 : vector<1x1x256xf32> to vector<1x256xf32>
    %7 = vector.broadcast %6 : vector<1x256xf32> to vector<8x256xf32>
    %8 = arith.addf %4, %7 : vector<8x256xf32>
    %cst_7 = arith.constant 0.000000e+00 : f32
    %9 = vector.broadcast %cst_7 : f32 to vector<8x256xf32>
    %10 = arith.maximumf %8, %9 : vector<8x256xf32>
    %11 = arith.truncf %10 : vector<8x256xf32> to vector<8x256xbf16>
    %c0_8 = arith.constant 0 : index
    %c0_9 = arith.constant 0 : index
    %c0_10 = arith.constant 0 : index
    %12 = vector.load %arg5[%c0_8, %c0_9, %c0_10] : memref<1x256x256xbf16, #tpu.memory_space<vmem>>, vector<1x256x256xbf16>
    %13 = vector.shape_cast %12 : vector<1x256x256xbf16> to vector<256x256xbf16>
    %cst_11 = arith.constant dense<0.000000e+00> : vector<8x256xf32>
    %14 = tpu.matmul %11, %13, %cst_11 {dimension_numbers = #tpu.dot_dimension_numbers<[1], [0], [0], [1], [0, 0, 1, 1], [], []>} : vector<8x256xbf16>, vector<256x256xbf16>, vector<8x256xf32> -> vector<8x256xf32>
    %c0_12 = arith.constant 0 : index
    %c0_13 = arith.constant 0 : index
    %c0_14 = arith.constant 0 : index
    %15 = vector.load %arg6[%c0_12, %c0_13, %c0_14] : memref<1x1x256xf32, #tpu.memory_space<vmem>>, vector<1x1x256xf32>
    %16 = vector.shape_cast %15 : vector<1x1x256xf32> to vector<1x256xf32>
    %17 = vector.broadcast %16 : vector<1x256xf32> to vector<8x256xf32>
    %18 = arith.addf %14, %17 : vector<8x256xf32>
    %cst_15 = arith.constant 0.000000e+00 : f32
    %19 = vector.broadcast %cst_15 : f32 to vector<8x256xf32>
    %20 = arith.maximumf %18, %19 : vector<8x256xf32>
    %21 = arith.truncf %20 : vector<8x256xf32> to vector<8x256xbf16>
    %c0_16 = arith.constant 0 : index
    %c0_17 = arith.constant 0 : index
    %c0_18 = arith.constant 0 : index
    %22 = vector.load %arg7[%c0_16, %c0_17, %c0_18] : memref<1x256x256xbf16, #tpu.memory_space<vmem>>, vector<1x256x256xbf16>
    %23 = vector.shape_cast %22 : vector<1x256x256xbf16> to vector<256x256xbf16>
    %cst_19 = arith.constant dense<0.000000e+00> : vector<8x256xf32>
    %24 = tpu.matmul %21, %23, %cst_19 {dimension_numbers = #tpu.dot_dimension_numbers<[1], [0], [0], [1], [0, 0, 1, 1], [], []>} : vector<8x256xbf16>, vector<256x256xbf16>, vector<8x256xf32> -> vector<8x256xf32>
    %c0_20 = arith.constant 0 : index
    %c0_21 = arith.constant 0 : index
    %c0_22 = arith.constant 0 : index
    %25 = vector.load %arg8[%c0_20, %c0_21, %c0_22] : memref<1x1x256xf32, #tpu.memory_space<vmem>>, vector<1x1x256xf32>
    %26 = vector.shape_cast %25 : vector<1x1x256xf32> to vector<1x256xf32>
    %27 = vector.broadcast %26 : vector<1x256xf32> to vector<8x256xf32>
    %28 = arith.addf %24, %27 : vector<8x256xf32>
    %29 = math.tanh %28 : vector<8x256xf32>
    %c0_23 = arith.constant 0 : index
    %c0_24 = arith.constant 0 : index
    %c0_25 = arith.constant 0 : index
    %30 = vector.load %arg9[%c0_23, %c0_24, %c0_25] : memref<1x8x256xf32, #tpu.memory_space<vmem>>, vector<1x8x256xf32>
    %31 = vector.shape_cast %30 : vector<1x8x256xf32> to vector<8x256xf32>
    %32 = vector.shape_cast %29 : vector<8x256xf32> to vector<1x8x256xf32>
    tpu.vector_store %arg9[%c0_23, %c0_24, %c0_25], %32 {strides = array<i32>} : memref<1x8x256xf32, #tpu.memory_space<vmem>>, vector<1x8x256xf32>,
    return
  }
  func.func @transform_0(%arg0: i32, %arg1: i32) -> (i32, i32) {
    %c0_i32 = arith.constant 0 : i32
    %c0_i32_0 = arith.constant 0 : i32
    return %arg1, %c0_i32 : i32, i32
  }
  func.func @transform_1(%arg0: i32, %arg1: i32) -> (i32, i32, i32) {
    %c0_i32 = arith.constant 0 : i32
    %c0_i32_0 = arith.constant 0 : i32
    %c0_i32_1 = arith.constant 0 : i32
    return %arg0, %c0_i32, %c0_i32_0 : i32, i32, i32
  }
  func.func @transform_2(%arg0: i32, %arg1: i32) -> (i32, i32, i32) {
    %c0_i32 = arith.constant 0 : i32
    %c0_i32_0 = arith.constant 0 : i32
    %c0_i32_1 = arith.constant 0 : i32
    return %arg0, %c0_i32, %c0_i32_0 : i32, i32, i32
  }
  func.func @transform_3(%arg0: i32, %arg1: i32) -> (i32, i32, i32) {
    %c0_i32 = arith.constant 0 : i32
    %c0_i32_0 = arith.constant 0 : i32
    %c0_i32_1 = arith.constant 0 : i32
    return %arg0, %c0_i32, %c0_i32_0 : i32, i32, i32
  }
  func.func @transform_4(%arg0: i32, %arg1: i32) -> (i32, i32, i32) {
    %c0_i32 = arith.constant 0 : i32
    %c0_i32_0 = arith.constant 0 : i32
    %c0_i32_1 = arith.constant 0 : i32
    return %arg0, %c0_i32, %c0_i32_0 : i32, i32, i32
  }
  func.func @transform_5(%arg0: i32, %arg1: i32) -> (i32, i32, i32) {
    %c0_i32 = arith.constant 0 : i32
    %c0_i32_0 = arith.constant 0 : i32
    %c0_i32_1 = arith.constant 0 : i32
    return %arg0, %c0_i32, %c0_i32_0 : i32, i32, i32
  }
  func.func @transform_6(%arg0: i32, %arg1: i32) -> (i32, i32, i32) {
    %c0_i32 = arith.constant 0 : i32
    %c0_i32_0 = arith.constant 0 : i32
    %c0_i32_1 = arith.constant 0 : i32
    return %arg0, %c0_i32, %c0_i32_0 : i32, i32, i32
  }
  func.func @transform_7(%arg0: i32, %arg1: i32) -> (i32, i32, i32) {
    %c0_i32 = arith.constant 0 : i32
    %c0_i32_0 = arith.constant 0 : i32
    return %arg0, %arg1, %c0_i32 : i32, i32, i32
  }
}

</mosaic_0001>

<bundles_post_ra>
// kernel: tpu_custom_call.1
= control target key start
LH: loop header
LB: loop body
LE: loop exit
PB: predicated region body
PF: predicated region fallthrough
CT: control target
= control target key end

     0   :  { %s2289_s0 = inlined_call_operand.hbm [shape: f32[8,128], index: 0, kind: input, shape index: {}]   ;;  %s2290_s1 = inlined_call_operand.hbm [shape: bf16[2,128,256], index: 1, kind: input, shape index: {}]   ;;  %s2291_s2 = inlined_call_operand.vmem [shape: f32[2,1,256], index: 2, kind: input, shape index: {}]   ;;  %s2292_s3 = inlined_call_operand.hbm [shape: bf16[2,256,256], index: 3, kind: input, shape index: {}]   ;;  %s2293_s4 = inlined_call_operand.vmem [shape: f32[2,1,256], index: 4, kind: input, shape index: {}]   ;;  %s2294_s5 = inlined_call_operand.hbm [shape: bf16[2,256,256], index: 5, kind: input, shape index: {}]   ;;  %s2295_s6 = inlined_call_operand.vmem [shape: f32[2,1,256], index: 6, kind: input, shape index: {}]   ;;  %s2296_s7 = inlined_call_operand.hbm [shape: f32[2,8,256], index: 7, kind: output, shape index: {}]  }
   0x1   :  { %2318 = sst [smem:[#allocation21_spill]] %s2290_s1 }
   0x2   :  { %2319 = sst [smem:[#allocation22_spill]] %s2296_s7 }
   0x3   :  { %12 = vsyncpa [#allocation3], 0 }
   0x4   :  { %13 = vsyncpa [#allocation6], 0 }
   0x5   :  { %15 = vsyncpa [#allocation6 + $0x1], 0 }
   0x6   :  { %16 = vsyncpa [#allocation9], 0 }
   0x7   :  { %18 = vsyncpa [#allocation9 + $0x1], 0 }
   0x8   :  { %19 = vsyncpa [#allocation4], 0 }
   0x9   :  { %21 = vsyncpa [#allocation4 + $0x1], 0  ;;  %s1884_s24 = smov 0   ;;  %s1886_s25 = smov 0  }
   0xa   :  { %s1888_s26 = smov 0   ;;  %s1890_s27 = smov 0  }
   0xb   :  { %s1892_s28 = smov 0   ;;  %s1894_s29 = smov 0  }
   0xc LB: > { %2320 = sst [smem:[#allocation15_spill]] %s1814_s24  ;;  %s39_s30 = sadd.s32 1, %s1830_s28  ;;  %s1834_s29 = sphi %s1894_s29, %s27_s29   ;;  %s1830_s28 = sphi %s1892_s28, %s2357_s28   ;;  %s1826_s27 = sphi %s1890_s27, %s2356_s27   ;;  %s1822_s26 = sphi %s1888_s26, %s2352_s26   ;;  %s1818_s25 = sphi %s1886_s25, %s2355_s25   ;;  %s1814_s24 = sphi %s1884_s24, %s2354_s24  }
   0xd   : > { %2321 = sst [smem:[#allocation16_spill]] %s1822_s26  ;;  %s72_s8 = sadd.s32 1, %s1822_s26 }
   0xe   : > { %2322 = sst [smem:[#allocation17_spill]] %s1834_s29  ;;  %p41_p0 = scmp.ge.s32.totalorder %s39_s30, 2 }
   0xf   : > { %p2297_p1 = scmp.ne.s32.totalorder %s1822_s26, %s1818_s25  ;;  %p80_p2 = scmp.eq.s32.totalorder %s1834_s29, 0 }
  0x10   : > { %s2359_s30 = smov (%p41_p0, %s39_s30), 0  ;;  %p1447_p5 = scmp.lt.s32.totalorder %s1834_s29, 2 }
  0x11   : > { %2323 = sst [smem:[#allocation18_spill]] %s2359_s30  ;;  %p81_p4 = por %p80_p2, %p2297_p1 }
  0x12   : > { %s69_s9 = ssub.s32 %s1830_s28, %s2359_s30  ;;  %s280_s10 = sand.u32 1, %s1834_s29  }
  0x13   : > { %p70_p6 = scmp.eq.s32.totalorder %s69_s9, 0  ;;  %s1930_s11 = sand.u32 1, %s1822_s26  }
  0x14   : > { %s1412_s12 = sshll.u32 %s1830_s28, 11  ;;  %s1309_s14 = sshll.u32 %s1930_s11, 7 }
  0x15   : > { %s1934_s13 = scalar_select %p70_p6, %s1822_s26, %s72_s8  }
  0x16   : > { %s2325_s1 = sld [smem:[#allocation21_spill]]  ;;  %p1942_p7 = pnand %p1447_p5, %p81_p4 }
  0x17   : > { %2324 = sst [smem:[#allocation19_spill]] %s1934_s13  ;;  %s284_s19 = scalar_lea.vmem [#allocation5], %s1309_s14 }
  0x18   : > { %s2326_s18 = scalar_select %p1942_p7, 1, 0 }
  0x19   : > { %s291_s20 = sshll.u32 %s284_s19, 4  ;;  %s1948_s21 = scalar_lea.sflag [#allocation6], %s280_s10  ;;  %s1946_s20 = int_to_ptr.vmem [resolvable:$true] %s291_s20 }
  0x1a   : > { %p1954_p9 = pneg %p1942_p7 }
  0x1c   : > { %s1940_s17 = scalar_lea.hbm %s2325_s1, %s1412_s12  ;;  %s1631_s12 = scalar_lea.hbm %s2325_s1, 4096 }
  0x1d   : > { %s1626_s22 = scalar_lea.hbm %s1940_s17, 2048  ;;  %p1632_p12 = scmp.lt.u32.totalorder %s1940_s17, %s2325_s1 }
  0x1e   : > { %p1627_p8 = scmp.ne.s32.totalorder %s1940_s17, %s1626_s22  ;;  %p1633_p13 = scmp.lt.u32.totalorder %s1631_s12, %s1626_s22 }
  0x1f   : > { %s2327_s23 = scalar_select %p1954_p9, 1, 0 }
  0x20   : > { %p1629_p10 = pnand %p1954_p9, %p1627_p8  ;;  %p1634_p0 = por %p1633_p13, %p1632_p12 }
  0x21   : > { %p1635_p2 = scmp.lt.u32.totalorder %s1626_s22, %s1940_s17 }
  0x22   : > { %p1630_p11 = pneg %p1629_p10 }
  0x23   : > { %p1636_p4 = por %p1635_p2, %p1634_p0 }
  0x25   : > { %p1637_p5 = pnand %p1636_p4, %p1630_p11 }
  0x27   : > { %1640 = shalt.err (!%p1637_p5)
}
  0x28   : > { %s1641_s10 = scalar_lea.vmem %s1946_s20, 2048  ;;  %s1836_s16 = smov [#allocation5]  }
  0x29   : > { %p1642_p6 = scmp.ne.s32.totalorder %s1946_s20, %s1641_s10  ;;  %s1646_s19 = sshll.u32 %s1836_s16, 4  ;;  %s1647_s19 = int_to_ptr.vmem [resolvable:$false] %s1646_s19 }
  0x2a   : > { %s1648_s8 = scalar_lea.vmem %s1647_s19, 4096  ;;  %p1649_p3 = scmp.lt.s32.totalorder %s1946_s20, %s1647_s19 }
  0x2b   : > { %p1644_p8 = pnand %p1642_p6, %p1954_p9  ;;  %p1650_p1 = scmp.lt.s32.totalorder %s1648_s8, %s1641_s10 }
  0x2d   : > { %p1645_p10 = pneg %p1644_p8  ;;  %p1651_p12 = por %p1650_p1, %p1649_p3 }
  0x2f   : > { %p1652_p13 = pnand %p1651_p12, %p1645_p10 }
  0x31   : > { %1655 = shalt.err (!%p1652_p13)
}
  0x32   : > { %s2298_s22 = smov 128   ;;  %s2300_s9 = smov 8  }
  0x33   : > { %1435 = dma.hbm_to_vmem [thread:$0]  (!%p1942_p7), %s1940_s17, 2048, %s1946_s20, %s1948_s21, %s2298_s22, %s2298_s22, %s2300_s9  }
  0x34   : > { %s1982_s12 = sadd.s32 4294967295, %s1834_s29   ;;  %s1305_s14 = sadd.s32 4294967294, %s1834_s29  }
  0x35   : > { %p85_p1 = scmp.ne.s32.totalorder %s1818_s25, %s1814_s24  ;;  %p2310_p3 = scmp.eq.s32.totalorder %s1982_s12, 0 }
  0x36   : > { %p241_p11 = scmp.eq.s32.totalorder %s1982_s12, 1  ;;  %p247_p0 = scmp.eq.s32.totalorder %s1305_s14, 1 }
  0x37   : > { %p1306_p2 = scmp.ge.s32.totalorder %s1834_s29, 1  ;;  %p1992_p4 = por %p2310_p3, %p85_p1 }
  0x38   : > { %p2329_p5 = scmp.ne.s32.totalorder %s1822_s26, %s1818_s25  ;;  %p2003_p8 = por %p247_p0, %p85_p1 }
  0x39   : > { %s2328_s15 = scalar_select %p1992_p4, 1, 0 }
  0x3a   : > { %p1999_p6 = por %p241_p11, %p2329_p5  ;;  %p254_p10 = scmp.lt.s32.totalorder %s1834_s29, 3 }
  0x3b   : > { %s2331_s20 = scalar_select %p2003_p8, 1, 0 }
  0x3c   : > { %s2330_s17 = scalar_select %p1999_p6, 1, 0 }
  0x3d   : > { %2332 = sst [smem:[#allocation20_spill]] %s2331_s20  ;;  %p2008_p12 = pnand %p1306_p2, %p254_p10 }
  0x3e   : > { %s1839_s16 = smov [#allocation2]   ;;  %s2307_s8 = sshll.u32 %s1930_s11, 8 }
  0x3f   : > { %s2333_s10 = scalar_select %p2008_p12, 1, 0 }
  0x40   : > { %s269_s19 = sshll.u32 %s1839_s16, 4  ;;  %p1428_p13 = pneg %p2008_p12  ;;  %s270_s19 = int_to_ptr.vmem [resolvable:$true] %s269_s19 }
  0x41   : > { %s1413_s14 = sshll.u32 %s1830_s28, 12  ;;  %s312_s22 = scalar_lea.vmem [#allocation7], %s2307_s8 }
  0x42   : > { %s319_s9 = sshll.u32 %s312_s22, 4  ;;  %p2020_p1 = pnand %p1428_p13, %p2310_p3  ;;  %s2031_s9 = int_to_ptr.vmem [resolvable:$true] %s319_s9 }
  0x43   : > { %s2029_s26 = scalar_lea.hbm %s2292_s3, %s1413_s14  ;;  %s1656_s20 = scalar_lea.hbm %s2289_s0, 128 }
  0x44   : > { %p1657_p11 = scmp.ne.s32.totalorder %s2289_s0, %s1656_s20  ;;  %p1658_p0 = pneg %p2020_p1 }
  0x45   : > { %p1663_p10 = scmp.lt.u32.totalorder %s1656_s20, %s2289_s0 }
  0x46   : > { %p1659_p2 = pnand %p1658_p0, %p1657_p11 }
  0x48   : > { %p1660_p5 = pneg %p1659_p2 }
  0x4a   : > { %p1665_p13 = pnand %p1663_p10, %p1660_p5 }
  0x4c   : > { %1668 = shalt.err (!%p1665_p13)
}
  0x4d   : > { %s1669_s30 = scalar_lea.vmem %s270_s19, 128  ;;  %p1677_p4 = scmp.lt.s32.totalorder %s270_s19, %s270_s19 }
  0x4e   : > { %p1670_p3 = scmp.ne.s32.totalorder %s270_s19, %s1669_s30  ;;  %p1678_p12 = scmp.lt.s32.totalorder %s1669_s30, %s1669_s30 }
  0x50   : > { %p1672_p8 = pnand %p1670_p3, %p1658_p0  ;;  %p1679_p7 = por %p1678_p12, %p1677_p4 }
  0x52   : > { %p1673_p6 = pneg %p1672_p8 }
  0x54   : > { %p1680_p9 = pnand %p1679_p7, %p1673_p6 }
  0x56   : > { %1683 = shalt.err (!%p1680_p9)
}
  0x57   : > { %1431 = dma.hbm_to_vmem [thread:$0]  (!%p2020_p1), %s2289_s0, 128, %s270_s19, [#allocation3]  }
  0x58   : > { %s1684_s7 = scalar_lea.hbm %s2029_s26, 4096  ;;  %p2335_p3 = scmp.ne.s32.totalorder %s2327_s23, 0 }
  0x59   : > { %p1685_p11 = scmp.ne.s32.totalorder %s2029_s26, %s1684_s7  ;;  %s1689_s8 = scalar_lea.hbm %s2292_s3, 8192 }
  0x5a   : > { %p1690_p7 = scmp.lt.u32.totalorder %s2029_s26, %s2292_s3  ;;  %p1691_p9 = scmp.lt.u32.totalorder %s1689_s8, %s1684_s7 }
  0x5b   : > { %p1687_p8 = pnand %p1685_p11, %p2335_p3  ;;  %p1693_p6 = scmp.lt.u32.totalorder %s1684_s7, %s2029_s26 }
  0x5c   : > { %p1692_p4 = por %p1691_p9, %p1690_p7 }
  0x5d   : > { %p1688_p0 = pneg %p1687_p8 }
  0x5e   : > { %p1694_p12 = por %p1693_p6, %p1692_p4 }
  0x60   : > { %p1695_p2 = pnand %p1694_p12, %p1688_p0 }
  0x62   : > { %1698 = shalt.err (!%p1695_p2)
}
  0x63   : > { %s1699_s19 = scalar_lea.vmem %s2031_s9, 4096  ;;  %s1840_s22 = smov [#allocation7]  }
  0x64   : > { %p1700_p1 = scmp.ne.s32.totalorder %s2031_s9, %s1699_s19  ;;  %s1704_s30 = sshll.u32 %s1840_s22, 4  ;;  %s1705_s30 = int_to_ptr.vmem [resolvable:$false] %s1704_s30 }
  0x65   : > { %s1706_s29 = scalar_lea.vmem %s1705_s30, 8192  ;;  %p1707_p13 = scmp.lt.s32.totalorder %s2031_s9, %s1705_s30 }
  0x66   : > { %p1702_p5 = pnand %p1700_p1, %p2335_p3  ;;  %p1708_p11 = scmp.lt.s32.totalorder %s1706_s29, %s1699_s19 }
  0x68   : > { %p1703_p10 = pneg %p1702_p5  ;;  %p1709_p8 = por %p1708_p11, %p1707_p13 }
  0x6a   : > { %p1710_p7 = pnand %p1709_p8, %p1703_p10 }
  0x6c   : > { %1713 = shalt.err (!%p1710_p7)
}
  0x6d   : > { %p2336_p0 = scmp.ne.s32.totalorder %s2326_s18, 0  ;;  %s2337_s13 = smov 8  }
  0x6e   : > { %s2338_s7 = smov 128   ;;  %s2079_s8 = scalar_lea.hbm %s2294_s5, %s1413_s14 }
  0x6f   : > { %1438 = dma.hbm_to_vmem [thread:$0]  (!%p2336_p0), %s2029_s26, 4096, %s2031_s9, %s1948_s21, %s2338_s7, %s2338_s7, %s2337_s13  }
  0x70   : > { %s2339_s16 = sshll.u32 %s1930_s11, 8  ;;  %s337_s22 = scalar_lea.sflag [#allocation9], %s1930_s11 }
  0x71   : > { %s340_s1 = scalar_lea.vmem [#allocation8], %s2339_s16  ;;  %s1714_s30 = scalar_lea.hbm %s2079_s8, 4096 }
  0x72   : > { %s347_s19 = sshll.u32 %s340_s1, 4  ;;  %p1715_p9 = scmp.ne.s32.totalorder %s2079_s8, %s1714_s30  ;;  %s2083_s19 = int_to_ptr.vmem [resolvable:$true] %s347_s19 }
  0x73   : > { %s1719_s9 = scalar_lea.hbm %s2294_s5, 8192  ;;  %p1720_p12 = scmp.lt.u32.totalorder %s2079_s8, %s2294_s5 }
  0x74   : > { %p1717_p4 = pnand %p1715_p9, %p2335_p3  ;;  %p1721_p2 = scmp.lt.u32.totalorder %s1719_s9, %s1714_s30 }
  0x75   : > { %p1723_p5 = scmp.lt.u32.totalorder %s1714_s30, %s2079_s8 }
  0x76   : > { %p1718_p6 = pneg %p1717_p4  ;;  %p1722_p1 = por %p1721_p2, %p1720_p12 }
  0x78   : > { %p1724_p10 = por %p1723_p5, %p1722_p1 }
  0x7a   : > { %p1725_p13 = pnand %p1724_p10, %p1718_p6 }
  0x7c   : > { %1728 = shalt.err (!%p1725_p13)
}
  0x7d   : > { %s1729_s24 = scalar_lea.vmem %s2083_s19, 4096  ;;  %s1841_s20 = smov [#allocation8]  }
  0x7e   : > { %p1730_p11 = scmp.ne.s32.totalorder %s2083_s19, %s1729_s24  ;;  %s1734_s16 = sshll.u32 %s1841_s20, 4  ;;  %s1735_s16 = int_to_ptr.vmem [resolvable:$false] %s1734_s16 }
  0x7f   : > { %s1736_s1 = scalar_lea.vmem %s1735_s16, 8192  ;;  %p1737_p9 = scmp.lt.s32.totalorder %s2083_s19, %s1735_s16 }
  0x80   : > { %p1732_p8 = pnand %p1730_p11, %p2335_p3  ;;  %p1738_p4 = scmp.lt.s32.totalorder %s1736_s1, %s1729_s24 }
  0x82   : > { %p1733_p7 = pneg %p1732_p8  ;;  %p1739_p12 = por %p1738_p4, %p1737_p9 }
  0x84   : > { %p1740_p2 = pnand %p1739_p12, %p1733_p7 }
  0x86   : > { %1743 = shalt.err (!%p1740_p2)
}
  0x87   : > { %1441 = dma.hbm_to_vmem [thread:$0]  (!%p2336_p0), %s2079_s8, 4096, %s2083_s19, %s337_s22, %s2338_s7, %s2338_s7, %s2337_s13  }
  0x88   : > { %p2340_p3 = scmp.ne.s32.totalorder %s2333_s10, 0 }
  0x89   : > { %p2341_p6 = scmp.eq.s32.totalorder (!%p2340_p3), %s1982_s12, 0 }
  0x8a   : > { %366 = sbr.rel (%p2340_p3) target bundleno = 867 (0x363), region = 48 }
  0x91   : > { %1797 = dma.done.wait (%p2341_p6), [#allocation3], 128   ;;  %p2342_p1 = pmov %p2341_p6 }
  0x92   : > { %s372_s18 = sand.u32 1, %s1982_s12   ;;  %s2120_s23 = sand.u32 1, %s1818_s25  }
  0x93   : > { %1799 = vsyncadd (%p2342_p1), [#allocation3], 4294967168  ;;  %s1320_s11 = sshll.u32 %s2120_s23, 7  ;;  %s373_s30 = scalar_lea.sflag [#allocation6], %s372_s18 }
  0x94   : > { %s2123_s26 = scalar_lea.vmem [#allocation5], %s1320_s11  ;;  %p2343_p0 = scmp.ne.s32.totalorder %s2328_s15, 0 }
  0x96   : > { %1801 = dma.done.wait (%p2343_p0), %s373_s30, 6144  }
  0x97   : > { %1803 = vsyncadd (%p2343_p0), %s373_s30, 4294961152  ;;  %s1321_s10 = sshll.u32 %s2120_s23, 8  ;;  %s391_s7 = scalar_lea.sflag [#allocation9], %s2120_s23 }
  0x98   : > { %s2130_s13 = scalar_lea.vmem [#allocation7], %s1321_s10  ;;  %s2133_s12 = scalar_lea.vmem [#allocation8], %s1321_s10 }
  0x99   : > { %1805 = dma.done.wait (%p2343_p0), %s391_s7, 4096  }
  0x9a   : > { %1807 = vsyncadd (%p2343_p0), %s391_s7, 4294963200  ;;  %v1842_v0 = vmov 0   ;;  %v1502_v1 = vld [vmem:[%s2123_s26 + $0x4] ss:$8 sps:$4 sm:$0xff]   ;;  %v1504_v2 = vld [vmem:[%s2123_s26] ss:$8 sps:$4 sm:$0xff]  }
  0x9b   : > { %602 = vmatprep.mubr.bf16.mxu0 %v1842_v0  ;;  %570 = vmatprep.subr.bf16.mxu0 %v1502_v1  ;;  %v1505_v3 = vld [vmem:[%s2123_s26 + $0x14] ss:$8 sps:$4 sm:$0xff]   ;;  %v1507_v4 = vld [vmem:[%s2123_s26 + $0x10] ss:$8 sps:$4 sm:$0xff]   ;;  %v1508_v5 = vld [vmem:[%s2123_s26 + $0x24] ss:$8 sps:$4 sm:$0xff]  }
  0x9c   : > { %571 = vmatpush1.bf16.msra.mxu0 %v1504_v2  ;;  %v1510_v6 = vld [vmem:[%s2123_s26 + $0x20] ss:$8 sps:$4 sm:$0xff]   ;;  %v1511_v7 = vld [vmem:[%s2123_s26 + $0x34] ss:$8 sps:$4 sm:$0xff]   ;;  %v1513_v8 = vld [vmem:[%s2123_s26 + $0x30] ss:$8 sps:$4 sm:$0xff]  }
  0x9d   : > { %572 = vmatprep.subr.bf16.mxu0 %v1505_v3  ;;  %v1514_v9 = vld [vmem:[%s2123_s26 + $0x44] ss:$8 sps:$4 sm:$0xff]   ;;  %v1528_v11 = vld [vmem:[%s2130_s13] ss:$8 sps:$4 sm:$0xff]   ;;  %v1529_v12 = vld [vmem:[%s2130_s13 + $0x14] ss:$8 sps:$4 sm:$0xff]  }
  0x9e   : > { %v1526_v10 = vld [vmem:[%s2130_s13 + $0x4] ss:$8 sps:$4 sm:$0xff]   ;;  %v1516_v13 = vld [vmem:[%s2123_s26 + $0x40] ss:$8 sps:$4 sm:$0xff]   ;;  %v1531_v14 = vld [vmem:[%s2130_s13 + $0x10] ss:$8 sps:$4 sm:$0xff]  }
  0x9f   : > { %819 = vmatprep.subr.bf16.mxu1 %v1526_v10  ;;  %v1532_v15 = vld [vmem:[%s2130_s13 + $0x24] ss:$8 sps:$4 sm:$0xff]   ;;  %v1517_v16 = vld [vmem:[%s2123_s26 + $0x54] ss:$8 sps:$4 sm:$0xff]   ;;  %v1519_v17 = vld [vmem:[%s2123_s26 + $0x50] ss:$8 sps:$4 sm:$0xff]  }
  0xa0   : > { %573 = vmatpush1.bf16.msra.mxu0 %v1507_v4  ;;  %820 = vmatpush1.bf16.msra.mxu1 %v1528_v11  ;;  %v1534_v18 = vld [vmem:[%s2130_s13 + $0x20] ss:$8 sps:$4 sm:$0xff]   ;;  %v1535_v19 = vld [vmem:[%s2130_s13 + $0x34] ss:$8 sps:$4 sm:$0xff]   ;;  %v1520_v20 = vld [vmem:[%s2123_s26 + $0x64] ss:$8 sps:$4 sm:$0xff]  }
  0xa1   : > { %574 = vmatprep.subr.bf16.mxu0 %v1508_v5  ;;  %821 = vmatprep.subr.bf16.mxu1 %v1529_v12  ;;  %v1522_v21 = vld [vmem:[%s2123_s26 + $0x60] ss:$8 sps:$4 sm:$0xff]   ;;  %v1537_v22 = vld [vmem:[%s2130_s13 + $0x30] ss:$8 sps:$4 sm:$0xff]   ;;  %v1538_v23 = vld [vmem:[%s2130_s13 + $0x44] ss:$8 sps:$4 sm:$0xff]  }
  0xa2   : > { %v1523_v24 = vld [vmem:[%s2123_s26 + $0x74] ss:$8 sps:$4 sm:$0xff]   ;;  %v1525_v25 = vld [vmem:[%s2123_s26 + $0x70] ss:$8 sps:$4 sm:$0xff]   ;;  %v1540_v27 = vld [vmem:[%s2130_s13 + $0x40] ss:$8 sps:$4 sm:$0xff]  }
  0xa3   : > { %v460_v26 = vld [vmem:[#allocation2] sm:$0xff]  ;;  %v1544_v30 = vld [vmem:[%s2130_s13 + $0x64] ss:$8 sps:$4 sm:$0xff]   ;;  %v1546_v32 = vld [vmem:[%s2130_s13 + $0x60] ss:$8 sps:$4 sm:$0xff]   ;;  %p447_p5 = scmp.lt.s32.totalorder %s1826_s27, 1 }
  0xa4   : > { %575 = vmatpush1.bf16.msra.mxu0 %v1510_v6  ;;  %822 = vmatpush1.bf16.msra.mxu1 %v1531_v14  ;;  %v1541_v28 = vld [vmem:[%s2130_s13 + $0x54] ss:$8 sps:$4 sm:$0xff]   ;;  %v1543_v29 = vld [vmem:[%s2130_s13 + $0x50] ss:$8 sps:$4 sm:$0xff]   ;;  %v461_v31 = vpack.c.bf16 %v460_v26, %v460_v26  ;;  %v1550_v35 = vld [vmem:[%s2130_s13 + $0x84] ss:$8 sps:$4 sm:$0xff]  }
  0xa5   : > { %576 = vmatprep.subr.bf16.mxu0 %v1511_v7  ;;  %823 = vmatprep.subr.bf16.mxu1 %v1532_v15  ;;  %v1547_v33 = vld [vmem:[%s2130_s13 + $0x74] ss:$8 sps:$4 sm:$0xff]   ;;  %v1549_v34 = vld [vmem:[%s2130_s13 + $0x70] ss:$8 sps:$4 sm:$0xff]   ;;  %v1552_v36 = vld [vmem:[%s2130_s13 + $0x80] ss:$8 sps:$4 sm:$0xff]   ;;  %v480_v15 = vlaneseq }
  0xa6   : > { %v1553_v37 = vld [vmem:[%s2130_s13 + $0x94] ss:$8 sps:$4 sm:$0xff]   ;;  %v1555_v38 = vld [vmem:[%s2130_s13 + $0x90] ss:$8 sps:$4 sm:$0xff]   ;;  %v1556_v39 = vld [vmem:[%s2130_s13 + $0xa4] ss:$8 sps:$4 sm:$0xff]  }
  0xa7   : > { %v1558_v40 = vld [vmem:[%s2130_s13 + $0xa0] ss:$8 sps:$4 sm:$0xff]   ;;  %v1559_v41 = vld [vmem:[%s2130_s13 + $0xb4] ss:$8 sps:$4 sm:$0xff]   ;;  %v1561_v42 = vld [vmem:[%s2130_s13 + $0xb0] ss:$8 sps:$4 sm:$0xff]  }
  0xa8   : > { %577 = vmatpush1.bf16.msra.mxu0 %v1513_v8  ;;  %824 = vmatpush1.bf16.msra.mxu1 %v1534_v18  ;;  %v1562_v43 = vld [vmem:[%s2130_s13 + $0xc4] ss:$8 sps:$4 sm:$0xff]   ;;  %v1564_v44 = vld [vmem:[%s2130_s13 + $0xc0] ss:$8 sps:$4 sm:$0xff]   ;;  %v1565_v45 = vld [vmem:[%s2130_s13 + $0xd4] ss:$8 sps:$4 sm:$0xff]  }
  0xa9   : > { %578 = vmatprep.subr.bf16.mxu0 %v1514_v9  ;;  %825 = vmatprep.subr.bf16.mxu1 %v1535_v19  ;;  %v1567_v46 = vld [vmem:[%s2130_s13 + $0xd0] ss:$8 sps:$4 sm:$0xff]   ;;  %v1568_v47 = vld [vmem:[%s2130_s13 + $0xe4] ss:$8 sps:$4 sm:$0xff]   ;;  %v1570_v48 = vld [vmem:[%s2130_s13 + $0xe0] ss:$8 sps:$4 sm:$0xff]  }
  0xaa   : > { %v1571_v49 = vld [vmem:[%s2130_s13 + $0xf4] ss:$8 sps:$4 sm:$0xff]   ;;  %v1573_v50 = vld [vmem:[%s2130_s13 + $0xf0] ss:$8 sps:$4 sm:$0xff]   ;;  %v1574_v51 = vld [vmem:[%s2133_s12] ss:$8 sps:$4 sm:$0xff]  }
  0xab   : > { %v1576_v52 = vld [vmem:[%s2133_s12 + $0x4] ss:$8 sps:$4 sm:$0xff]   ;;  %v1579_v53 = vld [vmem:[%s2133_s12 + $0x14] ss:$8 sps:$4 sm:$0xff]   ;;  %v1577_v54 = vld [vmem:[%s2133_s12 + $0x10] ss:$8 sps:$4 sm:$0xff]  }
  0xac   : > { %579 = vmatpush1.bf16.msra.mxu0 %v1516_v13  ;;  %826 = vmatpush1.bf16.msra.mxu1 %v1537_v22  ;;  %v1582_v55 = vld [vmem:[%s2133_s12 + $0x24] ss:$8 sps:$4 sm:$0xff]   ;;  %v1580_v56 = vld [vmem:[%s2133_s12 + $0x20] ss:$8 sps:$4 sm:$0xff]   ;;  %v1585_v57 = vld [vmem:[%s2133_s12 + $0x34] ss:$8 sps:$4 sm:$0xff]  }
  0xad   : > { %580 = vmatprep.subr.bf16.mxu0 %v1517_v16  ;;  %827 = vmatprep.subr.bf16.mxu1 %v1538_v23  ;;  %v1583_v58 = vld [vmem:[%s2133_s12 + $0x30] ss:$8 sps:$4 sm:$0xff]   ;;  %v1588_v59 = vld [vmem:[%s2133_s12 + $0x44] ss:$8 sps:$4 sm:$0xff]   ;;  %v1586_v60 = vld [vmem:[%s2133_s12 + $0x40] ss:$8 sps:$4 sm:$0xff]  }
  0xae   : > { %v1591_v61 = vld [vmem:[%s2133_s12 + $0x54] ss:$8 sps:$4 sm:$0xff]   ;;  %v1589_v62 = vld [vmem:[%s2133_s12 + $0x50] ss:$8 sps:$4 sm:$0xff]   ;;  %v1594_v63 = vld [vmem:[%s2133_s12 + $0x64] ss:$8 sps:$4 sm:$0xff]  }
  0xaf   : > { %v1592_v0 = vld [vmem:[%s2133_s12 + $0x60] ss:$8 sps:$4 sm:$0xff]   ;;  %v1597_v1 = vld [vmem:[%s2133_s12 + $0x74] ss:$8 sps:$4 sm:$0xff]   ;;  %v1595_v2 = vld [vmem:[%s2133_s12 + $0x70] ss:$8 sps:$4 sm:$0xff]  }
  0xb0   : > { %581 = vmatpush1.bf16.msra.mxu0 %v1519_v17  ;;  %828 = vmatpush1.bf16.msra.mxu1 %v1540_v27  ;;  %v1600_v3 = vld [vmem:[%s2133_s12 + $0x84] ss:$8 sps:$4 sm:$0xff]   ;;  %v1598_v4 = vld [vmem:[%s2133_s12 + $0x80] ss:$8 sps:$4 sm:$0xff]   ;;  %v1603_v5 = vld [vmem:[%s2133_s12 + $0x94] ss:$8 sps:$4 sm:$0xff]  }
  0xb1   : > { %582 = vmatprep.subr.bf16.mxu0 %v1520_v20  ;;  %829 = vmatprep.subr.bf16.mxu1 %v1541_v28  ;;  %v1601_v6 = vld [vmem:[%s2133_s12 + $0x90] ss:$8 sps:$4 sm:$0xff]   ;;  %v1606_v7 = vld [vmem:[%s2133_s12 + $0xa4] ss:$8 sps:$4 sm:$0xff]   ;;  %v1604_v8 = vld [vmem:[%s2133_s12 + $0xa0] ss:$8 sps:$4 sm:$0xff]  }
  0xb2   : > { %v1609_v9 = vld [vmem:[%s2133_s12 + $0xb4] ss:$8 sps:$4 sm:$0xff]   ;;  %v1607_v10 = vld [vmem:[%s2133_s12 + $0xb0] ss:$8 sps:$4 sm:$0xff]   ;;  %v1612_v11 = vld [vmem:[%s2133_s12 + $0xc4] ss:$8 sps:$4 sm:$0xff]  }
  0xb3   : > { %v1610_v12 = vld [vmem:[%s2133_s12 + $0xc0] ss:$8 sps:$4 sm:$0xff]   ;;  %v1615_v13 = vld [vmem:[%s2133_s12 + $0xd4] ss:$8 sps:$4 sm:$0xff]   ;;  %v1613_v14 = vld [vmem:[%s2133_s12 + $0xd0] ss:$8 sps:$4 sm:$0xff]  }
  0xb4   : > { %583 = vmatpush1.bf16.msra.mxu0 %v1522_v21  ;;  %830 = vmatpush1.bf16.msra.mxu1 %v1543_v29  ;;  %s448_s15 = scalar_select %p447_p5, %s1826_s27, 1  ;;  %v481_v16 = vshrl.u32 %v480_v15, 7 }
  0xb5   : > { %584 = vmatprep.subr.bf16.mxu0 %v1523_v24  ;;  %831 = vmatprep.subr.bf16.mxu1 %v1544_v30  ;;  %s1323_s1 = sshll.u32 %s2120_s23, 4  ;;  %s1415_s18 = sshll.u32 %s1826_s27, 8 }
  0xb6   : > { %s2217_s8 = sshll.u32 %s448_s15, 1  ;;  %v482_v17 = vsub.s32 0, %v481_v16  ;;  %v486_v19 = vsub.s32 1, %v481_v16  ;;  %s446_s11 = scalar_lea.vmem [#allocation10], %s1323_s1 }
  0xb7   : > { %s450_s21 = scalar_lea.vmem %s2291_s2, %s2217_s8  ;;  %s454_s29 = scalar_lea.vmem %s2293_s4, %s2217_s8 }
  0xb8   : > { %585 = vmatpush1.bf16.msra.mxu0 %v1525_v25  ;;  %832 = vmatpush1.bf16.msra.mxu1 %v1546_v32  ;;  %v478_v18 = vld [vmem:[%s450_s21] sm:$0x3]  ;;  %v1618_v32 = vld [vmem:[%s2133_s12 + $0xe4] ss:$8 sps:$4 sm:$0xff]   ;;  %s458_s16 = scalar_lea.vmem %s2295_s6, %s2217_s8  ;;  %s1130_s30 = sshll.u32 %s446_s11, 4  ;;  %s2242_s30 = int_to_ptr.vmem [resolvable:$true] %s1130_s30 }
  0xb9   : > { %833 = vmatprep.subr.bf16.mxu1 %v1547_v33  ;;  %1068 = vmatprep.subr.bf16.mxu0 %v1576_v52  ;;  %v483_v20 = vrot.slane %v478_v18, %v482_v17  ;;  %v487_v21 = vrot.slane %v478_v18, %v486_v19  ;;  %v1616_v33 = vld [vmem:[%s2133_s12 + $0xe0] ss:$8 sps:$4 sm:$0xff]   ;;  %s2344_s13 = sld [smem:[#allocation22_spill]]  ;;  %s1744_s15 = scalar_lea.vmem %s2242_s30, 256 }
  0xba   : > { %p1745_p10 = scmp.ne.s32.totalorder %s2242_s30, %s1744_s15  ;;  %p2345_p13 = scmp.ne.s32.totalorder %s2330_s17, 0 }
  0xbb   : > { %603 = vmatmul.mubr.bf16.vlgmr.msra.gmra.mrb[0].mxu0 %v461_v31  ;;  %s1843_s27 = smov [#allocation10]  }
  0xbc   : > { %834 = vmatpush1.bf16.msra.mxu1 %v1549_v34  ;;  %1069 = vmatpush1.bf16.msra.mxu0 %v1574_v51  ;;  %v1621_v34 = vld [vmem:[%s2133_s12 + $0xf4] ss:$8 sps:$4 sm:$0xff]   ;;  %p1746_p11 = pnand %p1745_p10, %p2345_p13  ;;  %s1748_s8 = sshll.u32 %s1843_s27, 4  ;;  %s1749_s8 = int_to_ptr.vmem [resolvable:$false] %s1748_s8 }
  0xbd   : > { %835 = vmatprep.subr.bf16.mxu1 %v1550_v35  ;;  %1070 = vmatprep.subr.bf16.mxu0 %v1579_v53  ;;  %v1619_v35 = vld [vmem:[%s2133_s12 + $0xf0] ss:$8 sps:$4 sm:$0xff]   ;;  %s1114_s12 = scalar_lea.sflag [#allocation4], %s2120_s23  ;;  %s1750_s19 = scalar_lea.vmem %s1749_s8, 512 }
  0xbe   : > { %p1747_p8 = pneg %p1746_p11  ;;  %p1751_p7 = scmp.lt.s32.totalorder %s2242_s30, %s1749_s8 }
  0xbf   : > { %s2240_s7 = scalar_lea.hbm %s2344_s13, %s1415_s18  ;;  %p1752_p9 = scmp.lt.s32.totalorder %s1750_s19, %s1744_s15 }
  0xc0   : > { %836 = vmatpush1.bf16.msra.mxu1 %v1552_v36  ;;  %1071 = vmatpush1.bf16.msra.mxu0 %v1577_v54  ;;  %v647_v36 = vld [vmem:[%s454_s29] sm:$0x3] }
  0xc1   : > { %837 = vmatprep.subr.bf16.mxu1 %v1553_v37  ;;  %1072 = vmatprep.subr.bf16.mxu0 %v1582_v55  ;;  %v652_v37 = vrot.slane %v647_v36, %v482_v17  ;;  %p1753_p4 = por %p1752_p9, %p1751_p7 }
  0xc3   : > { %p1754_p12 = pnand %p1753_p4, %p1747_p8 }
  0xc4   : > { %838 = vmatpush1.bf16.msra.mxu1 %v1555_v38  ;;  %1073 = vmatpush1.bf16.msra.mxu0 %v1580_v56  ;;  %v656_v38 = vrot.slane %v647_v36, %v486_v19 }
  0xc5   : > { %839 = vmatprep.subr.bf16.mxu1 %v1556_v39  ;;  %1074 = vmatprep.subr.bf16.mxu0 %v1585_v57 }
  0xc8   : > { %840 = vmatpush1.bf16.msra.mxu1 %v1558_v40  ;;  %1075 = vmatpush1.bf16.msra.mxu0 %v1583_v58 }
  0xc9   : > { %841 = vmatprep.subr.bf16.mxu1 %v1559_v41  ;;  %1076 = vmatprep.subr.bf16.mxu0 %v1588_v59 }
  0xcc   : > { %842 = vmatpush1.bf16.msra.mxu1 %v1561_v42  ;;  %1077 = vmatpush1.bf16.msra.mxu0 %v1586_v60 }
  0xcd   : > { %843 = vmatprep.subr.bf16.mxu1 %v1562_v43  ;;  %1078 = vmatprep.subr.bf16.mxu0 %v1591_v61 }
  0xd0   : > { %844 = vmatpush1.bf16.msra.mxu1 %v1564_v44  ;;  %1079 = vmatpush1.bf16.msra.mxu0 %v1589_v62 }
  0xd1   : > { %845 = vmatprep.subr.bf16.mxu1 %v1565_v45  ;;  %1080 = vmatprep.subr.bf16.mxu0 %v1594_v63 }
  0xd4   : > { %846 = vmatpush1.bf16.msra.mxu1 %v1567_v46  ;;  %1081 = vmatpush1.bf16.msra.mxu0 %v1592_v0 }
  0xd5   : > { %847 = vmatprep.subr.bf16.mxu1 %v1568_v47  ;;  %1082 = vmatprep.subr.bf16.mxu0 %v1597_v1 }
  0xd8   : > { %848 = vmatpush1.bf16.msra.mxu1 %v1570_v48  ;;  %1083 = vmatpush1.bf16.msra.mxu0 %v1595_v2 }
  0xd9   : > { %849 = vmatprep.subr.bf16.mxu1 %v1571_v49  ;;  %1084 = vmatprep.subr.bf16.mxu0 %v1600_v3  ;;  %v896_v49 = vld [vmem:[%s458_s16] sm:$0x3] }
  0xda   : > { %v905_v51 = vrot.slane %v896_v49, %v486_v19 }
  0xdc   : > { %850 = vmatpush1.bf16.msra.mxu1 %v1573_v50  ;;  %1085 = vmatpush1.bf16.msra.mxu0 %v1598_v4  ;;  %v901_v50 = vrot.slane %v896_v49, %v482_v17 }
  0xdd   : > { %1086 = vmatprep.subr.bf16.mxu0 %v1603_v5 }
  0xe0   : > { %1087 = vmatpush1.bf16.msra.mxu0 %v1601_v6 }
  0xe1   : > { %1088 = vmatprep.subr.bf16.mxu0 %v1606_v7 }
  0xe4   : > { %1089 = vmatpush1.bf16.msra.mxu0 %v1604_v8 }
  0xe5   : > { %1090 = vmatprep.subr.bf16.mxu0 %v1609_v9 }
  0xe8   : > { %1091 = vmatpush1.bf16.msra.mxu0 %v1607_v10 }
  0xe9   : > { %1092 = vmatprep.subr.bf16.mxu0 %v1612_v11 }
  0xec   : > { %1093 = vmatpush1.bf16.msra.mxu0 %v1610_v12 }
  0xed   : > { %1094 = vmatprep.subr.bf16.mxu0 %v1615_v13 }
  0xf0   : > { %1095 = vmatpush1.bf16.msra.mxu0 %v1613_v14 }
  0xf1   : > { %1096 = vmatprep.subr.bf16.mxu0 %v1618_v32 }
  0xf4   : > { %1097 = vmatpush1.bf16.msra.mxu0 %v1616_v33 }
  0xf5   : > { %1098 = vmatprep.subr.bf16.mxu0 %v1621_v34 }
  0xf8   : > { %1099 = vmatpush1.bf16.msra.mxu0 %v1619_v35 }
 0x18e   : > { %v604_v22 = vpop.f32.mrb[0].mxu0 }
 0x18f   : > { %v605_v23 = vadd.f32 %v604_v22, %v483_v20  ;;  %v606_v24 = vpop.f32.mrb[1].mxu0 }
 0x190   : > { %v607_v25 = vadd.f32 %v606_v24, %v487_v21  ;;  %v608_v26 = vpop.f32.mrb[2].mxu0 }
 0x191   : > { %v611_v27 = vmax.f32 %v605_v23, 0.0  ;;  %v609_v28 = vpop.f32.mrb[3].mxu0 }
 0x192   : > { %v612_v29 = vmax.f32 %v607_v25, 0.0 }
 0x193   : > { %v613_v31 = vpack.c.bf16 %v611_v27, %v611_v27 }
 0x194   : > { %v614_v30 = vpack.c.bf16 %v612_v29, %v612_v29 }
 0x196   : > { %851 = vmatprep.mubr.bf16.mxu1 %v614_v30 }
 0x197   : > { %852 = vmatmul.mubr.bf16.vlgmr.msra.gmra.mrb[0].mxu1 %v613_v31 }
 0x26a   : > { %v853_v39 = vpop.f32.mrb[0].mxu1 }
 0x26b   : > { %v854_v40 = vadd.f32 %v853_v39, %v652_v37  ;;  %v855_v41 = vpop.f32.mrb[1].mxu1 }
 0x26c   : > { %v856_v42 = vadd.f32 %v855_v41, %v656_v38  ;;  %v857_v43 = vpop.f32.mrb[2].mxu1 }
 0x26d   : > { %v860_v44 = vmax.f32 %v854_v40, 0.0  ;;  %v858_v45 = vpop.f32.mrb[3].mxu1 }
 0x26e   : > { %v861_v46 = vmax.f32 %v856_v42, 0.0 }
 0x26f   : > { %v862_v48 = vpack.c.bf16 %v860_v44, %v860_v44 }
 0x270   : > { %v863_v47 = vpack.c.bf16 %v861_v46, %v861_v46 }
 0x272   : > { %1100 = vmatprep.mubr.bf16.mxu0 %v863_v47 }
 0x273   : > { %1101 = vmatmul.mubr.bf16.vlgmr.msra.gmra.mrb[4].mxu0 %v862_v48 }
 0x346   : > { %v1102_v52 = vpop.f32.mrb[4].mxu0 }
 0x347   : > { %v1103_v53 = vadd.f32 %v1102_v52, %v901_v50  ;;  %v1104_v54 = vpop.f32.mrb[5].mxu0 }
 0x348   : > { %v1105_v55 = vadd.f32 %v1104_v54, %v905_v51  ;;  %v1106_v56 = vpop.f32.mrb[6].mxu0 }
 0x349   : > { %1622 = vtanh.f32 %v1103_v53  ;;  %v1107_v57 = vpop.f32.mrb[7].mxu0 }
 0x34a   : > { %1624 = vtanh.f32 %v1105_v55 }
 0x353   : > { %v1623_v58 = vpop.eup %1622 }
 0x354   : > { %v1625_v59 = vpop.eup %1624  ;;  %1111 = vst [vmem:[%s446_s11] sm:$0xff] %v1623_v58 }
 0x355   : > { %1112 = vst [vmem:[%s446_s11 + $0x8] sm:$0xff] %v1625_v59 }
 0x356   : > { %1757 = shalt.err (!%p1754_p12)
}
 0x357   : > { %s1758_s23 = scalar_lea.hbm %s2240_s7, 256  ;;  %s1762_s9 = scalar_lea.hbm %s2344_s13, 512 }
 0x358   : > { %p1759_p2 = scmp.ne.s32.totalorder %s2240_s7, %s1758_s23  ;;  %p1763_p1 = scmp.lt.u32.totalorder %s2240_s7, %s2344_s13 }
 0x359   : > { %p1764_p0 = scmp.lt.u32.totalorder %s1762_s9, %s1758_s23  ;;  %p1766_p10 = scmp.lt.u32.totalorder %s1758_s23, %s2240_s7 }
 0x35a   : > { %p1760_p3 = pnand %p1759_p2, %p2345_p13 }
 0x35b   : > { %p1765_p5 = por %p1764_p0, %p1763_p1 }
 0x35c   : > { %p1761_p6 = pneg %p1760_p3 }
 0x35d   : > { %p1767_p11 = por %p1766_p10, %p1765_p5 }
 0x35f   : > { %p1768_p8 = pnand %p1767_p11, %p1761_p6 }
 0x361   : > { %1771 = shalt.err (!%p1768_p8)
}
 0x362   : > { %1426 = dma.vmem_to_hbm [thread:$0]  (%p2345_p13), %s2242_s30, 256, %s2240_s7, %s1114_s12  }
 0x363 PF: > { %s2346_s24 = sld [smem:[#allocation15_spill]]  ;;  %s2347_s20 = sld [smem:[#allocation20_spill]] }
 0x364   : > { %s2348_s16 = sld [smem:[#allocation17_spill]] }
 0x369   : > { %s1142_s1 = sand.u32 1, %s2346_s24   ;;  %p2349_p7 = scmp.ne.s32.totalorder %s2347_s20, 0 }
 0x36a   : > { %p2350_p9 = scmp.ge.s32.totalorder %s2348_s16, 2  ;;  %s1143_s18 = scalar_lea.sflag [#allocation4], %s1142_s1 }
 0x36c   : > { %p1443_p4 = pnand %p2350_p9, %p2349_p7 }
 0x36e   : > { %1809 = dma.done.wait (!%p1443_p4), %s1143_s18, 256  }
 0x36f   : > { %1811 = vsyncadd (!%p1443_p4), %s1143_s18, 4294967040  ;;  %s27_s29 = sadd.s32 1, %s2348_s16   ;;  %s2351_s11 = sld [smem:[#allocation16_spill]] }
 0x370   : > { %p24_p12 = scmp.ge.s32.totalorder %s27_s29, 4   ;;  %s2352_s26 = sld [smem:[#allocation19_spill]] }
 0x371   : > { %s2353_s17 = sld [smem:[#allocation18_spill]]  ;;  %s2354_s24 = smov %s1818_s25 }
 0x372   : > { %s2356_s27 = smov %s1830_s28  ;;  %26 = sbr.rel (!%p24_p12) target bundleno = 12 (0xc), region = 132 }
 0x375   : > { %s2355_s25 = smov %s2351_s11 }
 0x377   : > { %s2357_s28 = smov %s2353_s17 }
 0x379   :  { %1148 = vsyncpa [#allocation3], 1 }
 0x37a   :  { %1150 = vsyncpa [#allocation3 + $0x1], 1 }
 0x37b   :  { %1151 = vsyncpa [#allocation6], 1 }
 0x37c   :  { %1153 = vsyncpa [#allocation6 + $0x1], 1 }
 0x37d   :  { %1154 = vsyncpa [#allocation9], 1 }
 0x37e   :  { %1156 = vsyncpa [#allocation9 + $0x1], 1 }
 0x37f   :  { %1157 = vsyncpa [#allocation4], 1 }
 0x380   :  { %1159 = vsyncpa [#allocation4 + $0x1], 1 }

</bundles_post_ra>
